<compile_context>
chip_gen: v5e
topology: v5e:2x2
jax: 0.10.0
libtpu: 0.0.40
codegen_flags: <defaults>
</compile_context>

<pallas_src>
import jax
import jax.numpy as jnp
from jax.experimental import pallas as pl
from jax.experimental.pallas import tpu as pltpu

HIDDEN = 128
N_BLOCKS = 12
LANE = 128
SUBLANE = 8


def _round_up(n, m):
    return ((n + m - 1) // m) * m


def resffn_kernel(x_ref, w_in_ref, b_in_ref, res_w_ref, res_b_ref,
                  w_out_ref, b_out_ref, o_ref):
    # fc_in + ReLU  (bf16 MXU inputs, f32 accumulation / elementwise)
    x_bf = x_ref[...].astype(jnp.bfloat16)
    h = jnp.dot(x_bf, w_in_ref[...], preferred_element_type=jnp.float32)
    h = jnp.maximum(h + b_in_ref[...], 0.0)

    # 12 residual blocks: h = h + relu(h @ W_k + b_k)  (dropout = identity in eval)
    for k in range(N_BLOCKS):
        out = jnp.dot(h.astype(jnp.bfloat16), res_w_ref[k],
                      preferred_element_type=jnp.float32)
        out = jnp.maximum(out + res_b_ref[k], 0.0)     # res_b_ref[k]: (1, HIDDEN)
        h = h + out

    # fc_out (lane-dense padded output width)
    logits = jnp.dot(h.astype(jnp.bfloat16), w_out_ref[...],
                     preferred_element_type=jnp.float32)
    o_ref[...] = (logits + b_out_ref[...]).astype(o_ref.dtype)


def resffn_forward(x, params, *, tb=256):
    """x: (B, d_in) float32. params: dict of f32 weights. Returns (B, d_out) f32 logits."""
    B, d_in = x.shape
    d_out = params["w_out"].shape[1]

    # ---- pad feature dims to lane-dense multiples of 128, cast matmul weights to bf16
    d_in_p = _round_up(d_in, LANE)
    d_out_p = _round_up(d_out, LANE)

    x_p = jnp.pad(x.astype(jnp.float32), ((0, 0), (0, d_in_p - d_in)))
    w_in = jnp.pad(params["w_in"], ((0, d_in_p - d_in), (0, 0))).astype(jnp.bfloat16)
    b_in = params["b_in"].astype(jnp.float32)                              # (1, HIDDEN)
    res_w = params["res_w"].astype(jnp.bfloat16)                           # (12, 128, 128)
    res_b = params["res_b"].reshape(N_BLOCKS, 1, HIDDEN).astype(jnp.float32)
    w_out = jnp.pad(params["w_out"], ((0, 0), (0, d_out_p - d_out))).astype(jnp.bfloat16)
    b_out = jnp.pad(params["b_out"], ((0, 0), (0, d_out_p - d_out))).astype(jnp.float32)

    # ---- batch tiling: big tiles fill the MXU M dim; tiny batch => single grid step
    if B <= tb:
        tb_eff = max(SUBLANE, _round_up(B, SUBLANE))
    else:
        tb_eff = tb
    B_p = _round_up(B, tb_eff)
    if B_p != B:
        x_p = jnp.pad(x_p, ((0, B_p - B), (0, 0)))
    grid = (B_p // tb_eff,)

    flops = 2 * B_p * (d_in_p * HIDDEN + N_BLOCKS * HIDDEN * HIDDEN + HIDDEN * d_out_p)
    bytes_accessed = (x_p.size * 4 + w_in.size * 2 + b_in.size * 4
                      + res_w.size * 2 + res_b.size * 4
                      + w_out.size * 2 + b_out.size * 4 + B_p * d_out_p * 4)

    out_p = pl.pallas_call(
        resffn_kernel,
        out_shape=jax.ShapeDtypeStruct((B_p, d_out_p), jnp.float32),
        grid_spec=pltpu.PrefetchScalarGridSpec(
            num_scalar_prefetch=0,
            grid=grid,
            in_specs=[
                pl.BlockSpec((tb_eff, d_in_p), lambda i: (i, 0)),               # x tile
                pl.BlockSpec((d_in_p, HIDDEN), lambda i: (0, 0)),               # W_in
                pl.BlockSpec((1, HIDDEN), lambda i: (0, 0)),                    # b_in
                pl.BlockSpec((N_BLOCKS, HIDDEN, HIDDEN), lambda i: (0, 0, 0)),  # res W
                pl.BlockSpec((N_BLOCKS, 1, HIDDEN), lambda i: (0, 0, 0)),       # res b
                pl.BlockSpec((HIDDEN, d_out_p), lambda i: (0, 0)),              # W_out
                pl.BlockSpec((1, d_out_p), lambda i: (0, 0)),                   # b_out
            ],
            out_specs=pl.BlockSpec((tb_eff, d_out_p), lambda i: (i, 0)),
        ),
        compiler_params=pltpu.CompilerParams(
            dimension_semantics=("parallel",)),
        cost_estimate=pl.CostEstimate(flops=flops, transcendentals=0,
                                      bytes_accessed=bytes_accessed),
    )(x_p, w_in, b_in, res_w, res_b, w_out, b_out)

    return out_p[:B, :d_out]


def init_params(key, input_size, output_size):
    """Deterministic synthetic parameters (PyTorch-style uniform fan-in init), f32."""
    ks = jax.random.split(key, 8)

    def linear(k, fan_in, fan_out):
        kw, kb = jax.random.split(k)
        bound = 1.0 / jnp.sqrt(fan_in)
        w = jax.random.uniform(kw, (fan_in, fan_out), jnp.float32, -bound, bound)
        b = jax.random.uniform(kb, (fan_out,), jnp.float32, -bound, bound)
        return w, b

    w_in, b_in = linear(ks[0], input_size, HIDDEN)
    res_ws, res_bs = [], []
    for k in jax.random.split(ks[1], N_BLOCKS):
        w, b = linear(k, HIDDEN, HIDDEN)
        res_ws.append(w)
        res_bs.append(b)
    w_out, b_out = linear(ks[2], HIDDEN, output_size)

    return {
        "w_in": w_in,
        "b_in": b_in.reshape(1, HIDDEN),
        "res_w": jnp.stack(res_ws, axis=0),      # (12, 128, 128)
        "res_b": jnp.stack(res_bs, axis=0),      # (12, 128)
        "w_out": w_out,
        "b_out": b_out.reshape(1, output_size),
    }


def resffn_reference(x, params):
    """Plain-JAX reference mirroring the kernel's bf16-input / f32-accumulate math."""
    bf = jnp.bfloat16
    h = jnp.dot(x.astype(bf), params["w_in"].astype(bf),
                preferred_element_type=jnp.float32) + params["b_in"]
    h = jnp.maximum(h, 0.0)
    for k in range(N_BLOCKS):
        out = jnp.dot(h.astype(bf), params["res_w"][k].astype(bf),
                      preferred_element_type=jnp.float32)
        out = jnp.maximum(out + params["res_b"][k][None, :], 0.0)
        h = h + out
    return jnp.dot(h.astype(bf), params["w_out"].astype(bf),
                   preferred_element_type=jnp.float32) + params["b_out"]


if __name__ == "__main__":
    key = jax.random.PRNGKey(0)
    k_param, k_x = jax.random.split(key)

    batch, input_size, output_size = 16, 32, 16
    params = init_params(k_param, input_size, output_size)
    x = jax.random.normal(k_x, (batch, input_size), jnp.float32)

    logits = resffn_forward(x, params, tb=256)
    logits = jax.block_until_ready(logits)

    ref = resffn_reference(x, params)
    assert logits.shape == (batch, output_size)
    # bf16 matmul inputs => compare against the bf16-mirrored reference.
    assert jnp.allclose(logits, ref, atol=1e-2, rtol=1e-2), "mismatch vs reference"

    print("KERNEL_OK")
</pallas_src>

<mosaic_0001>
module attributes {stable_mosaic.version = 11 : i64} {
  func.func @resffn_kernel(%arg0: i32, %arg1: memref<16x128xf32, #tpu.memory_space<vmem>>, %arg2: memref<128x128xbf16, #tpu.memory_space<vmem>>, %arg3: memref<1x128xf32, #tpu.memory_space<vmem>>, %arg4: memref<12x128x128xbf16, #tpu.memory_space<vmem>>, %arg5: memref<12x1x128xf32, #tpu.memory_space<vmem>>, %arg6: memref<128x128xbf16, #tpu.memory_space<vmem>>, %arg7: memref<1x128xf32, #tpu.memory_space<vmem>>, %arg8: memref<16x128xf32, #tpu.memory_space<vmem>>) attributes {dimension_semantics = [#tpu.dimension_semantics<parallel>], iteration_bounds = array<i64: 1>, scalar_prefetch = 0 : i64, scratch_operands = 0 : i64, tpu.core_type = #tpu.core_type<tc>, window_params = [{transform_indices = @transform_0, window_bounds = array<i64: 16, 128>}, {pipeline_mode = #tpu.pipeline_mode<synchronous>, transform_indices = @transform_1, window_bounds = array<i64: 128, 128>}, {pipeline_mode = #tpu.pipeline_mode<synchronous>, transform_indices = @transform_2, window_bounds = array<i64: 1, 128>}, {pipeline_mode = #tpu.pipeline_mode<synchronous>, transform_indices = @transform_3, window_bounds = array<i64: 12, 128, 128>}, {pipeline_mode = #tpu.pipeline_mode<synchronous>, transform_indices = @transform_4, window_bounds = array<i64: 12, 1, 128>}, {pipeline_mode = #tpu.pipeline_mode<synchronous>, transform_indices = @transform_5, window_bounds = array<i64: 128, 128>}, {pipeline_mode = #tpu.pipeline_mode<synchronous>, transform_indices = @transform_6, window_bounds = array<i64: 1, 128>}, {transform_indices = @transform_7, window_bounds = array<i64: 16, 128>}]} {
    %c0 = arith.constant 0 : index
    %c0_0 = arith.constant 0 : index
    %0 = vector.load %arg1[%c0, %c0_0] : memref<16x128xf32, #tpu.memory_space<vmem>>, vector<16x128xf32>
    %1 = arith.truncf %0 : vector<16x128xf32> to vector<16x128xbf16>
    %c0_1 = arith.constant 0 : index
    %c0_2 = arith.constant 0 : index
    %2 = vector.load %arg2[%c0_1, %c0_2] : memref<128x128xbf16, #tpu.memory_space<vmem>>, vector<128x128xbf16>
    %cst = arith.constant dense<0.000000e+00> : vector<16x128xf32>
    %3 = tpu.matmul %1, %2, %cst {dimension_numbers = #tpu.dot_dimension_numbers<[1], [0], [0], [1], [0, 0, 1, 1], [], []>} : vector<16x128xbf16>, vector<128x128xbf16>, vector<16x128xf32> -> vector<16x128xf32>
    %c0_3 = arith.constant 0 : index
    %c0_4 = arith.constant 0 : index
    %4 = vector.load %arg3[%c0_3, %c0_4] : memref<1x128xf32, #tpu.memory_space<vmem>>, vector<1x128xf32>
    %5 = vector.broadcast %4 : vector<1x128xf32> to vector<16x128xf32>
    %6 = arith.addf %3, %5 : vector<16x128xf32>
    %cst_5 = arith.constant 0.000000e+00 : f32
    %7 = vector.broadcast %cst_5 : f32 to vector<16x128xf32>
    %8 = arith.maximumf %6, %7 : vector<16x128xf32>
    %9 = arith.truncf %8 : vector<16x128xf32> to vector<16x128xbf16>
    %c0_6 = arith.constant 0 : index
    %c0_7 = arith.constant 0 : index
    %c0_8 = arith.constant 0 : index
    %10 = vector.load %arg4[%c0_6, %c0_7, %c0_8] : memref<12x128x128xbf16, #tpu.memory_space<vmem>>, vector<1x128x128xbf16>
    %11 = vector.shape_cast %10 : vector<1x128x128xbf16> to vector<128x128xbf16>
    %cst_9 = arith.constant dense<0.000000e+00> : vector<16x128xf32>
    %12 = tpu.matmul %9, %11, %cst_9 {dimension_numbers = #tpu.dot_dimension_numbers<[1], [0], [0], [1], [0, 0, 1, 1], [], []>} : vector<16x128xbf16>, vector<128x128xbf16>, vector<16x128xf32> -> vector<16x128xf32>
    %c0_10 = arith.constant 0 : index
    %c0_11 = arith.constant 0 : index
    %c0_12 = arith.constant 0 : index
    %13 = vector.load %arg5[%c0_10, %c0_11, %c0_12] : memref<12x1x128xf32, #tpu.memory_space<vmem>>, vector<1x1x128xf32>
    %14 = vector.shape_cast %13 : vector<1x1x128xf32> to vector<1x128xf32>
    %15 = vector.broadcast %14 : vector<1x128xf32> to vector<16x128xf32>
    %16 = arith.addf %12, %15 : vector<16x128xf32>
    %cst_13 = arith.constant 0.000000e+00 : f32
    %17 = vector.broadcast %cst_13 : f32 to vector<16x128xf32>
    %18 = arith.maximumf %16, %17 : vector<16x128xf32>
    %19 = arith.addf %8, %18 : vector<16x128xf32>
    %20 = arith.truncf %19 : vector<16x128xf32> to vector<16x128xbf16>
    %c1 = arith.constant 1 : index
    %c0_14 = arith.constant 0 : index
    %c0_15 = arith.constant 0 : index
    %21 = vector.load %arg4[%c1, %c0_14, %c0_15] : memref<12x128x128xbf16, #tpu.memory_space<vmem>>, vector<1x128x128xbf16>
    %22 = vector.shape_cast %21 : vector<1x128x128xbf16> to vector<128x128xbf16>
    %cst_16 = arith.constant dense<0.000000e+00> : vector<16x128xf32>
    %23 = tpu.matmul %20, %22, %cst_16 {dimension_numbers = #tpu.dot_dimension_numbers<[1], [0], [0], [1], [0, 0, 1, 1], [], []>} : vector<16x128xbf16>, vector<128x128xbf16>, vector<16x128xf32> -> vector<16x128xf32>
    %c1_17 = arith.constant 1 : index
    %c0_18 = arith.constant 0 : index
    %c0_19 = arith.constant 0 : index
    %24 = vector.load %arg5[%c1_17, %c0_18, %c0_19] : memref<12x1x128xf32, #tpu.memory_space<vmem>>, vector<1x1x128xf32>
    %25 = vector.shape_cast %24 : vector<1x1x128xf32> to vector<1x128xf32>
    %26 = vector.broadcast %25 : vector<1x128xf32> to vector<16x128xf32>
    %27 = arith.addf %23, %26 : vector<16x128xf32>
    %cst_20 = arith.constant 0.000000e+00 : f32
    %28 = vector.broadcast %cst_20 : f32 to vector<16x128xf32>
    %29 = arith.maximumf %27, %28 : vector<16x128xf32>
    %30 = arith.addf %19, %29 : vector<16x128xf32>
    %31 = arith.truncf %30 : vector<16x128xf32> to vector<16x128xbf16>
    %c2 = arith.constant 2 : index
    %c0_21 = arith.constant 0 : index
    %c0_22 = arith.constant 0 : index
    %32 = vector.load %arg4[%c2, %c0_21, %c0_22] : memref<12x128x128xbf16, #tpu.memory_space<vmem>>, vector<1x128x128xbf16>
    %33 = vector.shape_cast %32 : vector<1x128x128xbf16> to vector<128x128xbf16>
    %cst_23 = arith.constant dense<0.000000e+00> : vector<16x128xf32>
    %34 = tpu.matmul %31, %33, %cst_23 {dimension_numbers = #tpu.dot_dimension_numbers<[1], [0], [0], [1], [0, 0, 1, 1], [], []>} : vector<16x128xbf16>, vector<128x128xbf16>, vector<16x128xf32> -> vector<16x128xf32>
    %c2_24 = arith.constant 2 : index
    %c0_25 = arith.constant 0 : index
    %c0_26 = arith.constant 0 : index
    %35 = vector.load %arg5[%c2_24, %c0_25, %c0_26] : memref<12x1x128xf32, #tpu.memory_space<vmem>>, vector<1x1x128xf32>
    %36 = vector.shape_cast %35 : vector<1x1x128xf32> to vector<1x128xf32>
    %37 = vector.broadcast %36 : vector<1x128xf32> to vector<16x128xf32>
    %38 = arith.addf %34, %37 : vector<16x128xf32>
    %cst_27 = arith.constant 0.000000e+00 : f32
    %39 = vector.broadcast %cst_27 : f32 to vector<16x128xf32>
    %40 = arith.maximumf %38, %39 : vector<16x128xf32>
    %41 = arith.addf %30, %40 : vector<16x128xf32>
    %42 = arith.truncf %41 : vector<16x128xf32> to vector<16x128xbf16>
    %c3 = arith.constant 3 : index
    %c0_28 = arith.constant 0 : index
    %c0_29 = arith.constant 0 : index
    %43 = vector.load %arg4[%c3, %c0_28, %c0_29] : memref<12x128x128xbf16, #tpu.memory_space<vmem>>, vector<1x128x128xbf16>
    %44 = vector.shape_cast %43 : vector<1x128x128xbf16> to vector<128x128xbf16>
    %cst_30 = arith.constant dense<0.000000e+00> : vector<16x128xf32>
    %45 = tpu.matmul %42, %44, %cst_30 {dimension_numbers = #tpu.dot_dimension_numbers<[1], [0], [0], [1], [0, 0, 1, 1], [], []>} : vector<16x128xbf16>, vector<128x128xbf16>, vector<16x128xf32> -> vector<16x128xf32>
    %c3_31 = arith.constant 3 : index
    %c0_32 = arith.constant 0 : index
    %c0_33 = arith.constant 0 : index
    %46 = vector.load %arg5[%c3_31, %c0_32, %c0_33] : memref<12x1x128xf32, #tpu.memory_space<vmem>>, vector<1x1x128xf32>
    %47 = vector.shape_cast %46 : vector<1x1x128xf32> to vector<1x128xf32>
    %48 = vector.broadcast %47 : vector<1x128xf32> to vector<16x128xf32>
    %49 = arith.addf %45, %48 : vector<16x128xf32>
    %cst_34 = arith.constant 0.000000e+00 : f32
    %50 = vector.broadcast %cst_34 : f32 to vector<16x128xf32>
    %51 = arith.maximumf %49, %50 : vector<16x128xf32>
    %52 = arith.addf %41, %51 : vector<16x128xf32>
    %53 = arith.truncf %52 : vector<16x128xf32> to vector<16x128xbf16>
    %c4 = arith.constant 4 : index
    %c0_35 = arith.constant 0 : index
    %c0_36 = arith.constant 0 : index
    %54 = vector.load %arg4[%c4, %c0_35, %c0_36] : memref<12x128x128xbf16, #tpu.memory_space<vmem>>, vector<1x128x128xbf16>
    %55 = vector.shape_cast %54 : vector<1x128x128xbf16> to vector<128x128xbf16>
    %cst_37 = arith.constant dense<0.000000e+00> : vector<16x128xf32>
    %56 = tpu.matmul %53, %55, %cst_37 {dimension_numbers = #tpu.dot_dimension_numbers<[1], [0], [0], [1], [0, 0, 1, 1], [], []>} : vector<16x128xbf16>, vector<128x128xbf16>, vector<16x128xf32> -> vector<16x128xf32>
    %c4_38 = arith.constant 4 : index
    %c0_39 = arith.constant 0 : index
    %c0_40 = arith.constant 0 : index
    %57 = vector.load %arg5[%c4_38, %c0_39, %c0_40] : memref<12x1x128xf32, #tpu.memory_space<vmem>>, vector<1x1x128xf32>
    %58 = vector.shape_cast %57 : vector<1x1x128xf32> to vector<1x128xf32>
    %59 = vector.broadcast %58 : vector<1x128xf32> to vector<16x128xf32>
    %60 = arith.addf %56, %59 : vector<16x128xf32>
    %cst_41 = arith.constant 0.000000e+00 : f32
    %61 = vector.broadcast %cst_41 : f32 to vector<16x128xf32>
    %62 = arith.maximumf %60, %61 : vector<16x128xf32>
    %63 = arith.addf %52, %62 : vector<16x128xf32>
    %64 = arith.truncf %63 : vector<16x128xf32> to vector<16x128xbf16>
    %c5 = arith.constant 5 : index
    %c0_42 = arith.constant 0 : index
    %c0_43 = arith.constant 0 : index
    %65 = vector.load %arg4[%c5, %c0_42, %c0_43] : memref<12x128x128xbf16, #tpu.memory_space<vmem>>, vector<1x128x128xbf16>
    %66 = vector.shape_cast %65 : vector<1x128x128xbf16> to vector<128x128xbf16>
    %cst_44 = arith.constant dense<0.000000e+00> : vector<16x128xf32>
    %67 = tpu.matmul %64, %66, %cst_44 {dimension_numbers = #tpu.dot_dimension_numbers<[1], [0], [0], [1], [0, 0, 1, 1], [], []>} : vector<16x128xbf16>, vector<128x128xbf16>, vector<16x128xf32> -> vector<16x128xf32>
    %c5_45 = arith.constant 5 : index
    %c0_46 = arith.constant 0 : index
    %c0_47 = arith.constant 0 : index
    %68 = vector.load %arg5[%c5_45, %c0_46, %c0_47] : memref<12x1x128xf32, #tpu.memory_space<vmem>>, vector<1x1x128xf32>
    %69 = vector.shape_cast %68 : vector<1x1x128xf32> to vector<1x128xf32>
    %70 = vector.broadcast %69 : vector<1x128xf32> to vector<16x128xf32>
    %71 = arith.addf %67, %70 : vector<16x128xf32>
    %cst_48 = arith.constant 0.000000e+00 : f32
    %72 = vector.broadcast %cst_48 : f32 to vector<16x128xf32>
    %73 = arith.maximumf %71, %72 : vector<16x128xf32>
    %74 = arith.addf %63, %73 : vector<16x128xf32>
    %75 = arith.truncf %74 : vector<16x128xf32> to vector<16x128xbf16>
    %c6 = arith.constant 6 : index
    %c0_49 = arith.constant 0 : index
    %c0_50 = arith.constant 0 : index
    %76 = vector.load %arg4[%c6, %c0_49, %c0_50] : memref<12x128x128xbf16, #tpu.memory_space<vmem>>, vector<1x128x128xbf16>
    %77 = vector.shape_cast %76 : vector<1x128x128xbf16> to vector<128x128xbf16>
    %cst_51 = arith.constant dense<0.000000e+00> : vector<16x128xf32>
    %78 = tpu.matmul %75, %77, %cst_51 {dimension_numbers = #tpu.dot_dimension_numbers<[1], [0], [0], [1], [0, 0, 1, 1], [], []>} : vector<16x128xbf16>, vector<128x128xbf16>, vector<16x128xf32> -> vector<16x128xf32>
    %c6_52 = arith.constant 6 : index
    %c0_53 = arith.constant 0 : index
    %c0_54 = arith.constant 0 : index
    %79 = vector.load %arg5[%c6_52, %c0_53, %c0_54] : memref<12x1x128xf32, #tpu.memory_space<vmem>>, vector<1x1x128xf32>
    %80 = vector.shape_cast %79 : vector<1x1x128xf32> to vector<1x128xf32>
    %81 = vector.broadcast %80 : vector<1x128xf32> to vector<16x128xf32>
    %82 = arith.addf %78, %81 : vector<16x128xf32>
    %cst_55 = arith.constant 0.000000e+00 : f32
    %83 = vector.broadcast %cst_55 : f32 to vector<16x128xf32>
    %84 = arith.maximumf %82, %83 : vector<16x128xf32>
    %85 = arith.addf %74, %84 : vector<16x128xf32>
    %86 = arith.truncf %85 : vector<16x128xf32> to vector<16x128xbf16>
    %c7 = arith.constant 7 : index
    %c0_56 = arith.constant 0 : index
    %c0_57 = arith.constant 0 : index
    %87 = vector.load %arg4[%c7, %c0_56, %c0_57] : memref<12x128x128xbf16, #tpu.memory_space<vmem>>, vector<1x128x128xbf16>
    %88 = vector.shape_cast %87 : vector<1x128x128xbf16> to vector<128x128xbf16>
    %cst_58 = arith.constant dense<0.000000e+00> : vector<16x128xf32>
    %89 = tpu.matmul %86, %88, %cst_58 {dimension_numbers = #tpu.dot_dimension_numbers<[1], [0], [0], [1], [0, 0, 1, 1], [], []>} : vector<16x128xbf16>, vector<128x128xbf16>, vector<16x128xf32> -> vector<16x128xf32>
    %c7_59 = arith.constant 7 : index
    %c0_60 = arith.constant 0 : index
    %c0_61 = arith.constant 0 : index
    %90 = vector.load %arg5[%c7_59, %c0_60, %c0_61] : memref<12x1x128xf32, #tpu.memory_space<vmem>>, vector<1x1x128xf32>
    %91 = vector.shape_cast %90 : vector<1x1x128xf32> to vector<1x128xf32>
    %92 = vector.broadcast %91 : vector<1x128xf32> to vector<16x128xf32>
    %93 = arith.addf %89, %92 : vector<16x128xf32>
    %cst_62 = arith.constant 0.000000e+00 : f32
    %94 = vector.broadcast %cst_62 : f32 to vector<16x128xf32>
    %95 = arith.maximumf %93, %94 : vector<16x128xf32>
    %96 = arith.addf %85, %95 : vector<16x128xf32>
    %97 = arith.truncf %96 : vector<16x128xf32> to vector<16x128xbf16>
    %c8 = arith.constant 8 : index
    %c0_63 = arith.constant 0 : index
    %c0_64 = arith.constant 0 : index
    %98 = vector.load %arg4[%c8, %c0_63, %c0_64] : memref<12x128x128xbf16, #tpu.memory_space<vmem>>, vector<1x128x128xbf16>
    %99 = vector.shape_cast %98 : vector<1x128x128xbf16> to vector<128x128xbf16>
    %cst_65 = arith.constant dense<0.000000e+00> : vector<16x128xf32>
    %100 = tpu.matmul %97, %99, %cst_65 {dimension_numbers = #tpu.dot_dimension_numbers<[1], [0], [0], [1], [0, 0, 1, 1], [], []>} : vector<16x128xbf16>, vector<128x128xbf16>, vector<16x128xf32> -> vector<16x128xf32>
    %c8_66 = arith.constant 8 : index
    %c0_67 = arith.constant 0 : index
    %c0_68 = arith.constant 0 : index
    %101 = vector.load %arg5[%c8_66, %c0_67, %c0_68] : memref<12x1x128xf32, #tpu.memory_space<vmem>>, vector<1x1x128xf32>
    %102 = vector.shape_cast %101 : vector<1x1x128xf32> to vector<1x128xf32>
    %103 = vector.broadcast %102 : vector<1x128xf32> to vector<16x128xf32>
    %104 = arith.addf %100, %103 : vector<16x128xf32>
    %cst_69 = arith.constant 0.000000e+00 : f32
    %105 = vector.broadcast %cst_69 : f32 to vector<16x128xf32>
    %106 = arith.maximumf %104, %105 : vector<16x128xf32>
    %107 = arith.addf %96, %106 : vector<16x128xf32>
    %108 = arith.truncf %107 : vector<16x128xf32> to vector<16x128xbf16>
    %c9 = arith.constant 9 : index
    %c0_70 = arith.constant 0 : index
    %c0_71 = arith.constant 0 : index
    %109 = vector.load %arg4[%c9, %c0_70, %c0_71] : memref<12x128x128xbf16, #tpu.memory_space<vmem>>, vector<1x128x128xbf16>
    %110 = vector.shape_cast %109 : vector<1x128x128xbf16> to vector<128x128xbf16>
    %cst_72 = arith.constant dense<0.000000e+00> : vector<16x128xf32>
    %111 = tpu.matmul %108, %110, %cst_72 {dimension_numbers = #tpu.dot_dimension_numbers<[1], [0], [0], [1], [0, 0, 1, 1], [], []>} : vector<16x128xbf16>, vector<128x128xbf16>, vector<16x128xf32> -> vector<16x128xf32>
    %c9_73 = arith.constant 9 : index
    %c0_74 = arith.constant 0 : index
    %c0_75 = arith.constant 0 : index
    %112 = vector.load %arg5[%c9_73, %c0_74, %c0_75] : memref<12x1x128xf32, #tpu.memory_space<vmem>>, vector<1x1x128xf32>
    %113 = vector.shape_cast %112 : vector<1x1x128xf32> to vector<1x128xf32>
    %114 = vector.broadcast %113 : vector<1x128xf32> to vector<16x128xf32>
    %115 = arith.addf %111, %114 : vector<16x128xf32>
    %cst_76 = arith.constant 0.000000e+00 : f32
    %116 = vector.broadcast %cst_76 : f32 to vector<16x128xf32>
    %117 = arith.maximumf %115, %116 : vector<16x128xf32>
    %118 = arith.addf %107, %117 : vector<16x128xf32>
    %119 = arith.truncf %118 : vector<16x128xf32> to vector<16x128xbf16>
    %c10 = arith.constant 10 : index
    %c0_77 = arith.constant 0 : index
    %c0_78 = arith.constant 0 : index
    %120 = vector.load %arg4[%c10, %c0_77, %c0_78] : memref<12x128x128xbf16, #tpu.memory_space<vmem>>, vector<1x128x128xbf16>
    %121 = vector.shape_cast %120 : vector<1x128x128xbf16> to vector<128x128xbf16>
    %cst_79 = arith.constant dense<0.000000e+00> : vector<16x128xf32>
    %122 = tpu.matmul %119, %121, %cst_79 {dimension_numbers = #tpu.dot_dimension_numbers<[1], [0], [0], [1], [0, 0, 1, 1], [], []>} : vector<16x128xbf16>, vector<128x128xbf16>, vector<16x128xf32> -> vector<16x128xf32>
    %c10_80 = arith.constant 10 : index
    %c0_81 = arith.constant 0 : index
    %c0_82 = arith.constant 0 : index
    %123 = vector.load %arg5[%c10_80, %c0_81, %c0_82] : memref<12x1x128xf32, #tpu.memory_space<vmem>>, vector<1x1x128xf32>
    %124 = vector.shape_cast %123 : vector<1x1x128xf32> to vector<1x128xf32>
    %125 = vector.broadcast %124 : vector<1x128xf32> to vector<16x128xf32>
    %126 = arith.addf %122, %125 : vector<16x128xf32>
    %cst_83 = arith.constant 0.000000e+00 : f32
    %127 = vector.broadcast %cst_83 : f32 to vector<16x128xf32>
    %128 = arith.maximumf %126, %127 : vector<16x128xf32>
    %129 = arith.addf %118, %128 : vector<16x128xf32>
    %130 = arith.truncf %129 : vector<16x128xf32> to vector<16x128xbf16>
    %c11 = arith.constant 11 : index
    %c0_84 = arith.constant 0 : index
    %c0_85 = arith.constant 0 : index
    %131 = vector.load %arg4[%c11, %c0_84, %c0_85] : memref<12x128x128xbf16, #tpu.memory_space<vmem>>, vector<1x128x128xbf16>
    %132 = vector.shape_cast %131 : vector<1x128x128xbf16> to vector<128x128xbf16>
    %cst_86 = arith.constant dense<0.000000e+00> : vector<16x128xf32>
    %133 = tpu.matmul %130, %132, %cst_86 {dimension_numbers = #tpu.dot_dimension_numbers<[1], [0], [0], [1], [0, 0, 1, 1], [], []>} : vector<16x128xbf16>, vector<128x128xbf16>, vector<16x128xf32> -> vector<16x128xf32>
    %c11_87 = arith.constant 11 : index
    %c0_88 = arith.constant 0 : index
    %c0_89 = arith.constant 0 : index
    %134 = vector.load %arg5[%c11_87, %c0_88, %c0_89] : memref<12x1x128xf32, #tpu.memory_space<vmem>>, vector<1x1x128xf32>
    %135 = vector.shape_cast %134 : vector<1x1x128xf32> to vector<1x128xf32>
    %136 = vector.broadcast %135 : vector<1x128xf32> to vector<16x128xf32>
    %137 = arith.addf %133, %136 : vector<16x128xf32>
    %cst_90 = arith.constant 0.000000e+00 : f32
    %138 = vector.broadcast %cst_90 : f32 to vector<16x128xf32>
    %139 = arith.maximumf %137, %138 : vector<16x128xf32>
    %140 = arith.addf %129, %139 : vector<16x128xf32>
    %141 = arith.truncf %140 : vector<16x128xf32> to vector<16x128xbf16>
    %c0_91 = arith.constant 0 : index
    %c0_92 = arith.constant 0 : index
    %142 = vector.load %arg6[%c0_91, %c0_92] : memref<128x128xbf16, #tpu.memory_space<vmem>>, vector<128x128xbf16>
    %cst_93 = arith.constant dense<0.000000e+00> : vector<16x128xf32>
    %143 = tpu.matmul %141, %142, %cst_93 {dimension_numbers = #tpu.dot_dimension_numbers<[1], [0], [0], [1], [0, 0, 1, 1], [], []>} : vector<16x128xbf16>, vector<128x128xbf16>, vector<16x128xf32> -> vector<16x128xf32>
    %c0_94 = arith.constant 0 : index
    %c0_95 = arith.constant 0 : index
    %144 = vector.load %arg7[%c0_94, %c0_95] : memref<1x128xf32, #tpu.memory_space<vmem>>, vector<1x128xf32>
    %145 = vector.broadcast %144 : vector<1x128xf32> to vector<16x128xf32>
    %146 = arith.addf %143, %145 : vector<16x128xf32>
    %c0_96 = arith.constant 0 : index
    %c0_97 = arith.constant 0 : index
    %147 = vector.load %arg8[%c0_96, %c0_97] : memref<16x128xf32, #tpu.memory_space<vmem>>, vector<16x128xf32>
    tpu.vector_store %arg8[%c0_96, %c0_97], %146 {strides = array<i32>} : memref<16x128xf32, #tpu.memory_space<vmem>>, vector<16x128xf32>,
    return
  }
  func.func @transform_0(%arg0: i32) -> (i32, i32) {
    %c0_i32 = arith.constant 0 : i32
    %c0_i32_0 = arith.constant 0 : i32
    return %arg0, %c0_i32 : i32, i32
  }
  func.func @transform_1(%arg0: i32) -> (i32, i32) {
    %c0_i32 = arith.constant 0 : i32
    %c0_i32_0 = arith.constant 0 : i32
    %c0_i32_1 = arith.constant 0 : i32
    return %c0_i32, %c0_i32_0 : i32, i32
  }
  func.func @transform_2(%arg0: i32) -> (i32, i32) {
    %c0_i32 = arith.constant 0 : i32
    %c0_i32_0 = arith.constant 0 : i32
    %c0_i32_1 = arith.constant 0 : i32
    return %c0_i32, %c0_i32_0 : i32, i32
  }
  func.func @transform_3(%arg0: i32) -> (i32, i32, i32) {
    %c0_i32 = arith.constant 0 : i32
    %c0_i32_0 = arith.constant 0 : i32
    %c0_i32_1 = arith.constant 0 : i32
    %c0_i32_2 = arith.constant 0 : i32
    return %c0_i32, %c0_i32_0, %c0_i32_1 : i32, i32, i32
  }
  func.func @transform_4(%arg0: i32) -> (i32, i32, i32) {
    %c0_i32 = arith.constant 0 : i32
    %c0_i32_0 = arith.constant 0 : i32
    %c0_i32_1 = arith.constant 0 : i32
    %c0_i32_2 = arith.constant 0 : i32
    return %c0_i32, %c0_i32_0, %c0_i32_1 : i32, i32, i32
  }
  func.func @transform_5(%arg0: i32) -> (i32, i32) {
    %c0_i32 = arith.constant 0 : i32
    %c0_i32_0 = arith.constant 0 : i32
    %c0_i32_1 = arith.constant 0 : i32
    return %c0_i32, %c0_i32_0 : i32, i32
  }
  func.func @transform_6(%arg0: i32) -> (i32, i32) {
    %c0_i32 = arith.constant 0 : i32
    %c0_i32_0 = arith.constant 0 : i32
    %c0_i32_1 = arith.constant 0 : i32
    return %c0_i32, %c0_i32_0 : i32, i32
  }
  func.func @transform_7(%arg0: i32) -> (i32, i32) {
    %c0_i32 = arith.constant 0 : i32
    %c0_i32_0 = arith.constant 0 : i32
    return %arg0, %c0_i32 : i32, i32
  }
}

</mosaic_0001>

<bundles_post_ra>
// kernel: tpu_custom_call.1
= control target key start
LH: loop header
LB: loop body
LE: loop exit
PB: predicated region body
PF: predicated region fallthrough
CT: control target
= control target key end

     0   :  { %12 = vsyncpa [#allocation3], 0  ;;  %s2193_s0 = inlined_call_operand.hbm [shape: f32[16,128], index: 0, kind: input, shape index: {}]   ;;  %s2194_s1 = inlined_call_operand.hbm [shape: bf16[128,128], index: 1, kind: input, shape index: {}]   ;;  %s2195_s2 = inlined_call_operand.vmem [shape: f32[1,128], index: 2, kind: input, shape index: {}]   ;;  %s2196_s3 = inlined_call_operand.hbm [shape: bf16[12,128,128], index: 3, kind: input, shape index: {}]   ;;  %s2197_s4 = inlined_call_operand.hbm [shape: f32[12,1,128], index: 4, kind: input, shape index: {}]   ;;  %s2198_s5 = inlined_call_operand.hbm [shape: bf16[128,128], index: 5, kind: input, shape index: {}]   ;;  %s2199_s6 = inlined_call_operand.vmem [shape: f32[1,128], index: 6, kind: input, shape index: {}]   ;;  %s2200_s7 = inlined_call_operand.hbm [shape: f32[16,128], index: 7, kind: output, shape index: {}]  }
   0x1   :  { %13 = vsyncpa [#allocation6], 0 }
   0x2   :  { %14 = vsyncpa [#allocation9], 0  ;;  %s33_s26 = sshll.u32 %s2194_s1, 4  ;;  %s34_s26 = int_to_ptr.hbm [resolvable:$true] %s33_s26 }
   0x3   :  { %15 = vsyncpa [#allocation4], 0  ;;  %s2102_s27 = smov [#allocation5]   ;;  %s61_s8 = sshll.u32 %s2197_s4, 4  ;;  %s62_s8 = int_to_ptr.hbm [resolvable:$true] %s61_s8 }
   0x4   :  { %s35_s28 = sshll.u32 %s2102_s27, 4  ;;  %s2103_s9 = smov 64   ;;  %s36_s28 = int_to_ptr.vmem [resolvable:$true] %s35_s28 }
   0x5   :  { %s2104_s10 = smov 4   ;;  %s2105_s11 = smov [#allocation8]  }
   0x6   :  { %41 = dma.hbm_to_vmem [thread:$0]  %s34_s26, 1024, %s36_s28, [#allocation6], %s2103_s9, %s2103_s9, %s2104_s10  }
   0x7   :  { %s63_s12 = sshll.u32 %s2105_s11, 4  ;;  %s2106_s1 = smov 16   ;;  %s64_s12 = int_to_ptr.vmem [resolvable:$true] %s63_s12 }
   0x8   :  { %s2107_s13 = smov 1   ;;  %s20_s16 = sshll.u32 %s2193_s0, 4  ;;  %s21_s16 = int_to_ptr.hbm [resolvable:$true] %s20_s16 }
   0x9   :  { %69 = dma.hbm_to_vmem [thread:$0]  %s62_s8, 192, %s64_s12, [#allocation9], %s2106_s1, %s2106_s1, %s2107_s13  }
   0xa   :  { %s2108_s17 = smov [#allocation2]   ;;  %s48_s20 = sshll.u32 %s2196_s3, 4  ;;  %s49_s20 = int_to_ptr.hbm [resolvable:$true] %s48_s20 }
   0xb   :  { %s22_s4 = sshll.u32 %s2108_s17, 4  ;;  %s2109_s21 = smov 128   ;;  %s23_s4 = int_to_ptr.vmem [resolvable:$true] %s22_s4 }
   0xc   :  { %s2110_s22 = smov 8   ;;  %s2111_s23 = smov [#allocation7]  }
   0xd   :  { %28 = dma.hbm_to_vmem [thread:$0]  %s21_s16, 256, %s23_s4, [#allocation3], %s2109_s21, %s2109_s21, %s2110_s22  }
   0xe   :  { %s50_s24 = sshll.u32 %s2111_s23, 4  ;;  %s74_s0 = sshll.u32 %s2198_s5, 4  ;;  %s51_s24 = int_to_ptr.vmem [resolvable:$true] %s50_s24  ;;  %s75_s0 = int_to_ptr.hbm [resolvable:$true] %s74_s0 }
   0xf   :  { %56 = dma.hbm_to_vmem [thread:$0]  %s49_s20, 12288, %s51_s24, [#allocation6], %s2103_s9, %s2103_s9, %s2104_s10  }
  0x10   :  { %s2112_s3 = smov [#allocation10]  }
  0x11   :  { %s76_s27 = sshll.u32 %s2112_s3, 4  ;;  %s77_s27 = int_to_ptr.vmem [resolvable:$true] %s76_s27 }
  0x12   :  { %82 = dma.hbm_to_vmem [thread:$0]  %s75_s0, 1024, %s77_s27, [#allocation9], %s2103_s9, %s2103_s9, %s2104_s10  }
  0x13   :  { %2094 = dma.done.wait [#allocation3], 256  }
  0x14   :  { %2095 = vsyncadd [#allocation3], 4294967040 }
  0x15   :  { %2096 = dma.done.wait [#allocation6], 13312  }
  0x16   :  { %2097 = vsyncadd [#allocation6], 4294953984 }
  0x17   :  { %2098 = dma.done.wait [#allocation9], 1216  }
  0x18   :  { %2099 = vsyncadd [#allocation9], 4294966080  ;;  %v1819_v0 = vld [vmem:[#allocation5 + $0x38] sm:$0xff]  ;;  %v1818_v1 = vld [vmem:[#allocation5 + $0x30] sm:$0xff]  ;;  %s2113_s30 = smov [#allocation11]   ;;  %s1349_s11 = sshll.u32 %s2200_s7, 4  ;;  %s1350_s11 = int_to_ptr.hbm [resolvable:$true] %s1349_s11 }
  0x19   :  { %176 = vmatpush.bf16.msra.mxu0 %v1819_v0  ;;  %v1827_v2 = vld [vmem:[#allocation7 + $0x38] sm:$0xff]  ;;  %v1817_v3 = vld [vmem:[#allocation5 + $0x28] sm:$0xff]  ;;  %v1826_v4 = vld [vmem:[#allocation7 + $0x30] sm:$0xff]  ;;  %s1347_s8 = sshll.u32 %s2113_s30, 4  ;;  %s1348_s8 = int_to_ptr.vmem [resolvable:$true] %s1347_s8 }
  0x1a   :  { %261 = vmatpush.bf16.msra.mxu1 %v1827_v2  ;;  %v1825_v5 = vld [vmem:[#allocation7 + $0x28] sm:$0xff]  ;;  %v1816_v6 = vld [vmem:[#allocation5 + $0x20] sm:$0xff]  ;;  %v1815_v8 = vld [vmem:[#allocation5 + $0x18] sm:$0xff] }
  0x1b   :  { %v1824_v7 = vld [vmem:[#allocation7 + $0x20] sm:$0xff]  ;;  %v1814_v9 = vld [vmem:[#allocation5 + $0x10] sm:$0xff]  ;;  %v1813_v10 = vld [vmem:[#allocation5 + $0x8] sm:$0xff] }
  0x1c   :  { %v1812_v11 = vld [vmem:[#allocation5] sm:$0xff]  ;;  %v105_v12 = vld [vmem:[#allocation2] sm:$0xff]  ;;  %v106_v13 = vld [vmem:[#allocation2 + $0x8] sm:$0xff] }
  0x1d   :  { %177 = vmatpush.bf16.msra.mxu0 %v1818_v1  ;;  %v107_v14 = vpack.c.bf16 %v106_v13, %v105_v12  ;;  %v1823_v15 = vld [vmem:[#allocation7 + $0x18] sm:$0xff]  ;;  %v1822_v16 = vld [vmem:[#allocation7 + $0x10] sm:$0xff]  ;;  %v1821_v17 = vld [vmem:[#allocation7 + $0x8] sm:$0xff] }
  0x1e   :  { %262 = vmatpush.bf16.msra.mxu1 %v1826_v4  ;;  %v1820_v18 = vld [vmem:[#allocation7] sm:$0xff]  ;;  %v1835_v19 = vld [vmem:[#allocation7 + $0x78] sm:$0xff]  ;;  %v1834_v20 = vld [vmem:[#allocation7 + $0x70] sm:$0xff] }
  0x1f   :  { %350 = vmatpush.bf16.msra.mxu2 %v1835_v19  ;;  %v1833_v21 = vld [vmem:[#allocation7 + $0x68] sm:$0xff]  ;;  %v1832_v22 = vld [vmem:[#allocation7 + $0x60] sm:$0xff]  ;;  %v1936_v24 = vld [vmem:[%s2195_s2] ss:$0 sm:$0xff] }
  0x20   :  { %v1831_v31 = vld [vmem:[#allocation7 + $0x58] sm:$0xff]  ;;  %v1830_v32 = vld [vmem:[#allocation7 + $0x50] sm:$0xff]  ;;  %v1829_v33 = vld [vmem:[#allocation7 + $0x48] sm:$0xff] }
  0x21   :  { %178 = vmatpush.bf16.msra.mxu0 %v1817_v3  ;;  %v1828_v34 = vld [vmem:[#allocation7 + $0x40] sm:$0xff]  ;;  %v1843_v35 = vld [vmem:[#allocation7 + $0xb8] sm:$0xff]  ;;  %v1842_v36 = vld [vmem:[#allocation7 + $0xb0] sm:$0xff] }
  0x22   :  { %263 = vmatpush.bf16.msra.mxu1 %v1825_v5  ;;  %439 = vmatpush.bf16.msra.mxu3 %v1843_v35  ;;  %v1841_v37 = vld [vmem:[#allocation7 + $0xa8] sm:$0xff]  ;;  %v1840_v38 = vld [vmem:[#allocation7 + $0xa0] sm:$0xff]  ;;  %v1839_v49 = vld [vmem:[#allocation7 + $0x98] sm:$0xff] }
  0x23   :  { %351 = vmatpush.bf16.msra.mxu2 %v1834_v20  ;;  %v1937_v40 = vld [vmem:[#allocation8] ss:$0 sm:$0xff]  ;;  %v1838_v50 = vld [vmem:[#allocation7 + $0x90] sm:$0xff]  ;;  %v1837_v51 = vld [vmem:[#allocation7 + $0x88] sm:$0xff] }
  0x24   :  { %v1836_v52 = vld [vmem:[#allocation7 + $0x80] sm:$0xff]  ;;  %v1851_v53 = vld [vmem:[#allocation7 + $0xf8] sm:$0xff]  ;;  %v1850_v54 = vld [vmem:[#allocation7 + $0xf0] sm:$0xff] }
  0x25   :  { %179 = vmatpush.bf16.msra.mxu0 %v1816_v6  ;;  %v1849_v55 = vld [vmem:[#allocation7 + $0xe8] sm:$0xff]  ;;  %v1848_v56 = vld [vmem:[#allocation7 + $0xe0] sm:$0xff]  ;;  %v1847_v3 = vld [vmem:[#allocation7 + $0xd8] sm:$0xff] }
  0x26   :  { %264 = vmatpush.bf16.msra.mxu1 %v1824_v7  ;;  %440 = vmatpush.bf16.msra.mxu3 %v1842_v36  ;;  %v1938_v58 = vld [vmem:[#allocation8 + $0x1] ss:$0 sm:$0xff]  ;;  %v1846_v4 = vld [vmem:[#allocation7 + $0xd0] sm:$0xff]  ;;  %v1845_v5 = vld [vmem:[#allocation7 + $0xc8] sm:$0xff] }
  0x27   :  { %352 = vmatpush.bf16.msra.mxu2 %v1833_v21  ;;  %v1844_v6 = vld [vmem:[#allocation7 + $0xc0] sm:$0xff]  ;;  %v1859_v7 = vld [vmem:[#allocation7 + $0x138] sm:$0xff] }
  0x28   :  { %v1939_v12 = vld [vmem:[#allocation8 + $0x2] ss:$0 sm:$0xff]  ;;  %v1855_v21 = vld [vmem:[#allocation7 + $0x118] sm:$0xff] }
  0x29   :  { %180 = vmatpush.bf16.msra.mxu0 %v1815_v8  ;;  %v1858_v8 = vld [vmem:[#allocation7 + $0x130] sm:$0xff] }
  0x2a   :  { %265 = vmatpush.bf16.msra.mxu1 %v1823_v15  ;;  %441 = vmatpush.bf16.msra.mxu3 %v1841_v37 }
  0x2b   :  { %353 = vmatpush.bf16.msra.mxu2 %v1832_v22  ;;  %v1854_v22 = vld [vmem:[#allocation7 + $0x110] sm:$0xff] }
  0x2d   :  { %181 = vmatpush.bf16.msra.mxu0 %v1814_v9  ;;  %v1857_v9 = vld [vmem:[#allocation7 + $0x128] sm:$0xff] }
  0x2e   :  { %266 = vmatpush.bf16.msra.mxu1 %v1822_v16  ;;  %442 = vmatpush.bf16.msra.mxu3 %v1840_v38 }
  0x2f   :  { %354 = vmatpush.bf16.msra.mxu2 %v1831_v31 }
  0x31   :  { %182 = vmatpush.bf16.msra.mxu0 %v1813_v10  ;;  %v1856_v10 = vld [vmem:[#allocation7 + $0x120] sm:$0xff] }
  0x32   :  { %267 = vmatpush.bf16.msra.mxu1 %v1821_v17  ;;  %443 = vmatpush.bf16.msra.mxu3 %v1839_v49 }
  0x33   :  { %355 = vmatpush.bf16.msra.mxu2 %v1830_v32 }
  0x35   :  { %183 = vmatpush.bf16.msra.mxu0 %v1812_v11 }
  0x36   :  { %268 = vmatpush.bf16.msra.mxu1 %v1820_v18  ;;  %444 = vmatpush.bf16.msra.mxu3 %v1838_v50 }
  0x37   :  { %356 = vmatpush.bf16.msra.mxu2 %v1829_v33 }
  0x38   :  { %184 = vmatmul.bf16.vlgmr.msra.gmra.mxu0 %v107_v14 }
  0x39   :  { %528 = vmatpush.bf16.msrb.mxu0 %v1851_v53 }
  0x3a   :  { %445 = vmatpush.bf16.msra.mxu3 %v1837_v51  ;;  %617 = vmatpush.bf16.msrb.mxu1 %v1859_v7 }
  0x3b   :  { %357 = vmatpush.bf16.msra.mxu2 %v1828_v34 }
  0x3d   :  { %529 = vmatpush.bf16.msrb.mxu0 %v1850_v54 }
  0x3e   :  { %446 = vmatpush.bf16.msra.mxu3 %v1836_v52  ;;  %618 = vmatpush.bf16.msrb.mxu1 %v1858_v8 }
  0x41   :  { %530 = vmatpush.bf16.msrb.mxu0 %v1849_v55 }
  0x42   :  { %619 = vmatpush.bf16.msrb.mxu1 %v1857_v9 }
  0x45   :  { %531 = vmatpush.bf16.msrb.mxu0 %v1848_v56 }
  0x46   :  { %620 = vmatpush.bf16.msrb.mxu1 %v1856_v10 }
  0x49   :  { %532 = vmatpush.bf16.msrb.mxu0 %v1847_v3 }
  0x4a   :  { %621 = vmatpush.bf16.msrb.mxu1 %v1855_v21 }
  0x4d   :  { %533 = vmatpush.bf16.msrb.mxu0 %v1846_v4 }
  0x4e   :  { %622 = vmatpush.bf16.msrb.mxu1 %v1854_v22 }
  0x51   :  { %534 = vmatpush.bf16.msrb.mxu0 %v1845_v5 }
  0x55   :  { %535 = vmatpush.bf16.msrb.mxu0 %v1844_v6 }
  0xb5   :  { %v185_v23 = vpop.f32.mrf.mxu0 }
  0xb6   :  { %v186_v25 = vadd.f32 %v1936_v24, %v185_v23  ;;  %v1853_v23 = vld [vmem:[#allocation7 + $0x108] sm:$0xff] }
  0xb7   :  { %623 = vmatpush.bf16.msrb.mxu1 %v1853_v23 }
  0xb8   :  { %v190_v28 = vmax.f32 %v186_v25, 0.0  ;;  %v1867_v25 = vld [vmem:[#allocation7 + $0x178] sm:$0xff] }
  0xb9   :  { %706 = vmatpush.bf16.msrb.mxu2 %v1867_v25 }
  0xbd   :  { %v187_v26 = vpop.f32.mrf.mxu0 }
  0xbe   :  { %v188_v27 = vadd.f32 %v1936_v24, %v187_v26  ;;  %v1852_v24 = vld [vmem:[#allocation7 + $0x100] sm:$0xff]  ;;  %v1866_v26 = vld [vmem:[#allocation7 + $0x170] sm:$0xff] }
  0xbf   :  { %624 = vmatpush.bf16.msrb.mxu1 %v1852_v24  ;;  %707 = vmatpush.bf16.msrb.mxu2 %v1866_v26 }
  0xc0   :  { %v191_v29 = vmax.f32 %v188_v27, 0.0  ;;  %v1865_v27 = vld [vmem:[#allocation7 + $0x168] sm:$0xff] }
  0xc2   :  { %v192_v30 = vpack.c.bf16 %v191_v29, %v190_v28 }
  0xc3   :  { %708 = vmatpush.bf16.msrb.mxu2 %v1865_v27 }
  0xc4   :  { %269 = vmatmul.bf16.vlgmr.msra.gmra.mxu1 %v192_v30  ;;  %v1940_v30 = vld [vmem:[#allocation8 + $0x3] ss:$0 sm:$0xff] }
 0x141   :  { %v270_v39 = vpop.f32.mrf.mxu1 }
 0x142   :  { %v271_v41 = vadd.f32 %v1937_v40, %v270_v39  ;;  %v1863_v39 = vld [vmem:[#allocation7 + $0x158] sm:$0xff] }
 0x144   :  { %v275_v43 = vmax.f32 %v271_v41, 0.0  ;;  %v1861_v41 = vld [vmem:[#allocation7 + $0x148] sm:$0xff] }
 0x146   :  { %v277_v46 = vadd.f32 %v275_v43, %v190_v28  ;;  %v1864_v28 = vld [vmem:[#allocation7 + $0x160] sm:$0xff]  ;;  %v1875_v43 = vld [vmem:[#allocation7 + $0x1b8] sm:$0xff] }
 0x147   :  { %709 = vmatpush.bf16.msrb.mxu2 %v1864_v28  ;;  %795 = vmatpush.bf16.msrb.mxu3 %v1875_v43 }
 0x149   :  { %v272_v42 = vpop.f32.mrf.mxu1 }
 0x14a   :  { %v273_v44 = vadd.f32 %v1937_v40, %v272_v42  ;;  %v1862_v40 = vld [vmem:[#allocation7 + $0x150] sm:$0xff]  ;;  %v1860_v42 = vld [vmem:[#allocation7 + $0x140] sm:$0xff] }
 0x14b   :  { %710 = vmatpush.bf16.msrb.mxu2 %v1863_v39 }
 0x14c   :  { %v276_v45 = vmax.f32 %v273_v44, 0.0  ;;  %v1874_v44 = vld [vmem:[#allocation7 + $0x1b0] sm:$0xff] }
 0x14d   :  { %796 = vmatpush.bf16.msrb.mxu3 %v1874_v44 }
 0x14e   :  { %v278_v47 = vadd.f32 %v276_v45, %v191_v29  ;;  %v1873_v45 = vld [vmem:[#allocation7 + $0x1a8] sm:$0xff] }
 0x14f   :  { %711 = vmatpush.bf16.msrb.mxu2 %v1862_v40 }
 0x150   :  { %v279_v48 = vpack.c.bf16 %v278_v47, %v277_v46 }
 0x151   :  { %797 = vmatpush.bf16.msrb.mxu3 %v1873_v45 }
 0x152   :  { %358 = vmatmul.bf16.vlgmr.msra.gmra.mxu2 %v279_v48  ;;  %v1941_v48 = vld [vmem:[#allocation8 + $0x4] ss:$0 sm:$0xff] }
 0x153   :  { %712 = vmatpush.bf16.msrb.mxu2 %v1861_v41 }
 0x157   :  { %713 = vmatpush.bf16.msrb.mxu2 %v1860_v42 }
 0x1d5   :  { %v359_v57 = vpop.f32.mrf.mxu2 }
 0x1d6   :  { %v360_v59 = vadd.f32 %v1938_v58, %v359_v57  ;;  %v1871_v57 = vld [vmem:[#allocation7 + $0x198] sm:$0xff] }
 0x1d8   :  { %v364_v61 = vmax.f32 %v360_v59, 0.0  ;;  %v1869_v59 = vld [vmem:[#allocation7 + $0x188] sm:$0xff] }
 0x1da   :  { %v366_v0 = vadd.f32 %v364_v61, %v277_v46  ;;  %v1872_v46 = vld [vmem:[#allocation7 + $0x1a0] sm:$0xff]  ;;  %v1883_v61 = vld [vmem:[#allocation7 + $0x1f8] sm:$0xff] }
 0x1db   :  { %798 = vmatpush.bf16.msrb.mxu3 %v1872_v46  ;;  %884 = vmatpush.bf16.msra.mxu0 %v1883_v61 }
 0x1dd   :  { %v361_v60 = vpop.f32.mrf.mxu2 }
 0x1de   :  { %v362_v62 = vadd.f32 %v1938_v58, %v361_v60  ;;  %v1870_v58 = vld [vmem:[#allocation7 + $0x190] sm:$0xff]  ;;  %v1868_v60 = vld [vmem:[#allocation7 + $0x180] sm:$0xff] }
 0x1df   :  { %799 = vmatpush.bf16.msrb.mxu3 %v1871_v57 }
 0x1e0   :  { %v365_v63 = vmax.f32 %v362_v62, 0.0  ;;  %v1882_v62 = vld [vmem:[#allocation7 + $0x1f0] sm:$0xff] }
 0x1e1   :  { %885 = vmatpush.bf16.msra.mxu0 %v1882_v62 }
 0x1e2   :  { %v367_v1 = vadd.f32 %v365_v63, %v278_v47  ;;  %v1881_v63 = vld [vmem:[#allocation7 + $0x1e8] sm:$0xff] }
 0x1e3   :  { %800 = vmatpush.bf16.msrb.mxu3 %v1870_v58 }
 0x1e4   :  { %v368_v2 = vpack.c.bf16 %v367_v1, %v366_v0 }
 0x1e5   :  { %886 = vmatpush.bf16.msra.mxu0 %v1881_v63 }
 0x1e6   :  { %447 = vmatmul.bf16.vlgmr.msra.gmra.mxu3 %v368_v2  ;;  %v1942_v2 = vld [vmem:[#allocation8 + $0x5] ss:$0 sm:$0xff] }
 0x1e7   :  { %801 = vmatpush.bf16.msrb.mxu3 %v1869_v59 }
 0x1eb   :  { %802 = vmatpush.bf16.msrb.mxu3 %v1868_v60 }
 0x269   :  { %v448_v11 = vpop.f32.mrf.mxu3 }
 0x26a   :  { %v449_v13 = vadd.f32 %v1939_v12, %v448_v11  ;;  %v1879_v11 = vld [vmem:[#allocation7 + $0x1d8] sm:$0xff] }
 0x26c   :  { %v453_v15 = vmax.f32 %v449_v13, 0.0  ;;  %v1877_v13 = vld [vmem:[#allocation7 + $0x1c8] sm:$0xff] }
 0x26e   :  { %v455_v18 = vadd.f32 %v453_v15, %v366_v0  ;;  %v1880_v0 = vld [vmem:[#allocation7 + $0x1e0] sm:$0xff]  ;;  %v1891_v15 = vld [vmem:[#allocation7 + $0x238] sm:$0xff] }
 0x26f   :  { %887 = vmatpush.bf16.msra.mxu0 %v1880_v0  ;;  %973 = vmatpush.bf16.msra.mxu1 %v1891_v15 }
 0x271   :  { %v450_v14 = vpop.f32.mrf.mxu3 }
 0x272   :  { %v451_v16 = vadd.f32 %v1939_v12, %v450_v14  ;;  %v1878_v12 = vld [vmem:[#allocation7 + $0x1d0] sm:$0xff]  ;;  %v1876_v14 = vld [vmem:[#allocation7 + $0x1c0] sm:$0xff] }
 0x273   :  { %888 = vmatpush.bf16.msra.mxu0 %v1879_v11 }
 0x274   :  { %v454_v17 = vmax.f32 %v451_v16, 0.0  ;;  %v1890_v16 = vld [vmem:[#allocation7 + $0x230] sm:$0xff] }
 0x275   :  { %974 = vmatpush.bf16.msra.mxu1 %v1890_v16 }
 0x276   :  { %v456_v19 = vadd.f32 %v454_v17, %v367_v1  ;;  %v1889_v17 = vld [vmem:[#allocation7 + $0x228] sm:$0xff] }
 0x277   :  { %889 = vmatpush.bf16.msra.mxu0 %v1878_v12 }
 0x278   :  { %v457_v20 = vpack.c.bf16 %v456_v19, %v455_v18 }
 0x279   :  { %975 = vmatpush.bf16.msra.mxu1 %v1889_v17 }
 0x27a   :  { %536 = vmatmul.bf16.vlgmr.msrb.gmra.mxu0 %v457_v20  ;;  %v1943_v20 = vld [vmem:[#allocation8 + $0x6] ss:$0 sm:$0xff] }
 0x27b   :  { %890 = vmatpush.bf16.msra.mxu0 %v1877_v13 }
 0x27f   :  { %891 = vmatpush.bf16.msra.mxu0 %v1876_v14 }
 0x2f7   :  { %v537_v29 = vpop.f32.mrf.mxu0 }
 0x2f8   :  { %v538_v31 = vadd.f32 %v1940_v30, %v537_v29  ;;  %v1887_v29 = vld [vmem:[#allocation7 + $0x218] sm:$0xff] }
 0x2fa   :  { %v542_v33 = vmax.f32 %v538_v31, 0.0  ;;  %v1885_v31 = vld [vmem:[#allocation7 + $0x208] sm:$0xff] }
 0x2fc   :  { %v544_v36 = vadd.f32 %v542_v33, %v455_v18  ;;  %v1888_v18 = vld [vmem:[#allocation7 + $0x220] sm:$0xff]  ;;  %v1899_v33 = vld [vmem:[#allocation7 + $0x278] sm:$0xff] }
 0x2fd   :  { %976 = vmatpush.bf16.msra.mxu1 %v1888_v18  ;;  %1062 = vmatpush.bf16.msra.mxu2 %v1899_v33 }
 0x2ff   :  { %v539_v32 = vpop.f32.mrf.mxu0 }
 0x300   :  { %v540_v34 = vadd.f32 %v1940_v30, %v539_v32  ;;  %v1886_v30 = vld [vmem:[#allocation7 + $0x210] sm:$0xff]  ;;  %v1884_v32 = vld [vmem:[#allocation7 + $0x200] sm:$0xff] }
 0x301   :  { %977 = vmatpush.bf16.msra.mxu1 %v1887_v29 }
 0x302   :  { %v543_v35 = vmax.f32 %v540_v34, 0.0  ;;  %v1898_v34 = vld [vmem:[#allocation7 + $0x270] sm:$0xff] }
 0x303   :  { %1063 = vmatpush.bf16.msra.mxu2 %v1898_v34 }
 0x304   :  { %v545_v37 = vadd.f32 %v543_v35, %v456_v19  ;;  %v1897_v35 = vld [vmem:[#allocation7 + $0x268] sm:$0xff] }
 0x305   :  { %978 = vmatpush.bf16.msra.mxu1 %v1886_v30 }
 0x306   :  { %v546_v38 = vpack.c.bf16 %v545_v37, %v544_v36 }
 0x307   :  { %1064 = vmatpush.bf16.msra.mxu2 %v1897_v35 }
 0x308   :  { %625 = vmatmul.bf16.vlgmr.msrb.gmra.mxu1 %v546_v38  ;;  %v1944_v38 = vld [vmem:[#allocation8 + $0x7] ss:$0 sm:$0xff] }
 0x309   :  { %979 = vmatpush.bf16.msra.mxu1 %v1885_v31 }
 0x30d   :  { %980 = vmatpush.bf16.msra.mxu1 %v1884_v32 }
 0x385   :  { %v626_v47 = vpop.f32.mrf.mxu1 }
 0x386   :  { %v627_v49 = vadd.f32 %v1941_v48, %v626_v47  ;;  %v1895_v47 = vld [vmem:[#allocation7 + $0x258] sm:$0xff] }
 0x388   :  { %v631_v51 = vmax.f32 %v627_v49, 0.0  ;;  %v1893_v49 = vld [vmem:[#allocation7 + $0x248] sm:$0xff] }
 0x38a   :  { %v633_v54 = vadd.f32 %v631_v51, %v544_v36  ;;  %v1896_v36 = vld [vmem:[#allocation7 + $0x260] sm:$0xff]  ;;  %v1907_v51 = vld [vmem:[#allocation7 + $0x2b8] sm:$0xff] }
 0x38b   :  { %1065 = vmatpush.bf16.msra.mxu2 %v1896_v36  ;;  %1151 = vmatpush.bf16.msra.mxu3 %v1907_v51  ;;  %v1949_v51 = vld [vmem:[%s2199_s6] ss:$0 sm:$0xff] }
 0x38d   :  { %v628_v50 = vpop.f32.mrf.mxu1 }
 0x38e   :  { %v629_v52 = vadd.f32 %v1941_v48, %v628_v50  ;;  %v1894_v48 = vld [vmem:[#allocation7 + $0x250] sm:$0xff]  ;;  %v1892_v50 = vld [vmem:[#allocation7 + $0x240] sm:$0xff] }
 0x38f   :  { %1066 = vmatpush.bf16.msra.mxu2 %v1895_v47 }
 0x390   :  { %v632_v53 = vmax.f32 %v629_v52, 0.0  ;;  %v1906_v52 = vld [vmem:[#allocation7 + $0x2b0] sm:$0xff] }
 0x391   :  { %1152 = vmatpush.bf16.msra.mxu3 %v1906_v52 }
 0x392   :  { %v634_v55 = vadd.f32 %v632_v53, %v545_v37  ;;  %v1905_v53 = vld [vmem:[#allocation7 + $0x2a8] sm:$0xff] }
 0x393   :  { %1067 = vmatpush.bf16.msra.mxu2 %v1894_v48 }
 0x394   :  { %v635_v56 = vpack.c.bf16 %v634_v55, %v633_v54 }
 0x395   :  { %1153 = vmatpush.bf16.msra.mxu3 %v1905_v53 }
 0x396   :  { %714 = vmatmul.bf16.vlgmr.msrb.gmra.mxu2 %v635_v56  ;;  %v1945_v56 = vld [vmem:[#allocation8 + $0x8] ss:$0 sm:$0xff] }
 0x397   :  { %1068 = vmatpush.bf16.msra.mxu2 %v1893_v49 }
 0x39b   :  { %1069 = vmatpush.bf16.msra.mxu2 %v1892_v50 }
 0x419   :  { %v715_v1 = vpop.f32.mrf.mxu2 }
 0x41a   :  { %v716_v3 = vadd.f32 %v1942_v2, %v715_v1  ;;  %v1903_v1 = vld [vmem:[#allocation7 + $0x298] sm:$0xff] }
 0x41c   :  { %v720_v5 = vmax.f32 %v716_v3, 0.0  ;;  %v1901_v3 = vld [vmem:[#allocation7 + $0x288] sm:$0xff] }
 0x41e   :  { %v722_v8 = vadd.f32 %v720_v5, %v633_v54  ;;  %v1904_v54 = vld [vmem:[#allocation7 + $0x2a0] sm:$0xff]  ;;  %v1915_v5 = vld [vmem:[#allocation7 + $0x2f8] sm:$0xff] }
 0x41f   :  { %1154 = vmatpush.bf16.msra.mxu3 %v1904_v54  ;;  %1240 = vmatpush.bf16.msrb.mxu0 %v1915_v5 }
 0x421   :  { %v717_v4 = vpop.f32.mrf.mxu2 }
 0x422   :  { %v718_v6 = vadd.f32 %v1942_v2, %v717_v4  ;;  %v1902_v2 = vld [vmem:[#allocation7 + $0x290] sm:$0xff]  ;;  %v1900_v4 = vld [vmem:[#allocation7 + $0x280] sm:$0xff] }
 0x423   :  { %1155 = vmatpush.bf16.msra.mxu3 %v1903_v1 }
 0x424   :  { %v721_v7 = vmax.f32 %v718_v6, 0.0  ;;  %v1914_v6 = vld [vmem:[#allocation7 + $0x2f0] sm:$0xff] }
 0x425   :  { %1241 = vmatpush.bf16.msrb.mxu0 %v1914_v6 }
 0x426   :  { %v723_v9 = vadd.f32 %v721_v7, %v634_v55  ;;  %v1913_v7 = vld [vmem:[#allocation7 + $0x2e8] sm:$0xff] }
 0x427   :  { %1156 = vmatpush.bf16.msra.mxu3 %v1902_v2 }
 0x428   :  { %v724_v10 = vpack.c.bf16 %v723_v9, %v722_v8 }
 0x429   :  { %1242 = vmatpush.bf16.msrb.mxu0 %v1913_v7 }
 0x42a   :  { %803 = vmatmul.bf16.vlgmr.msrb.gmra.mxu3 %v724_v10  ;;  %v1946_v10 = vld [vmem:[#allocation8 + $0x9] ss:$0 sm:$0xff] }
 0x42b   :  { %1157 = vmatpush.bf16.msra.mxu3 %v1901_v3 }
 0x42f   :  { %1158 = vmatpush.bf16.msra.mxu3 %v1900_v4 }
 0x4ad   :  { %v804_v19 = vpop.f32.mrf.mxu3 }
 0x4ae   :  { %v805_v21 = vadd.f32 %v1943_v20, %v804_v19  ;;  %v1911_v19 = vld [vmem:[#allocation7 + $0x2d8] sm:$0xff] }
 0x4b0   :  { %v809_v23 = vmax.f32 %v805_v21, 0.0  ;;  %v1909_v21 = vld [vmem:[#allocation7 + $0x2c8] sm:$0xff] }
 0x4b2   :  { %v811_v26 = vadd.f32 %v809_v23, %v722_v8  ;;  %v1912_v8 = vld [vmem:[#allocation7 + $0x2e0] sm:$0xff] }
 0x4b3   :  { %1243 = vmatpush.bf16.msrb.mxu0 %v1912_v8  ;;  %v1923_v23 = vld [vmem:[#allocation10 + $0x38] sm:$0xff] }
 0x4b4   :  { %1327 = vmatpush.bf16.msrb.mxu1 %v1923_v23 }
 0x4b5   :  { %v806_v22 = vpop.f32.mrf.mxu3 }
 0x4b6   :  { %v807_v24 = vadd.f32 %v1943_v20, %v806_v22  ;;  %v1910_v20 = vld [vmem:[#allocation7 + $0x2d0] sm:$0xff]  ;;  %v1908_v22 = vld [vmem:[#allocation7 + $0x2c0] sm:$0xff] }
 0x4b7   :  { %1244 = vmatpush.bf16.msrb.mxu0 %v1911_v19 }
 0x4b8   :  { %v810_v25 = vmax.f32 %v807_v24, 0.0  ;;  %v1922_v24 = vld [vmem:[#allocation10 + $0x30] sm:$0xff] }
 0x4b9   :  { %1328 = vmatpush.bf16.msrb.mxu1 %v1922_v24 }
 0x4ba   :  { %v812_v27 = vadd.f32 %v810_v25, %v723_v9  ;;  %v1921_v25 = vld [vmem:[#allocation10 + $0x28] sm:$0xff] }
 0x4bb   :  { %1245 = vmatpush.bf16.msrb.mxu0 %v1910_v20 }
 0x4bc   :  { %v813_v28 = vpack.c.bf16 %v812_v27, %v811_v26 }
 0x4bd   :  { %1329 = vmatpush.bf16.msrb.mxu1 %v1921_v25 }
 0x4be   :  { %892 = vmatmul.bf16.vlgmr.msra.gmra.mxu0 %v813_v28  ;;  %v1947_v28 = vld [vmem:[#allocation8 + $0xa] ss:$0 sm:$0xff] }
 0x4bf   :  { %1246 = vmatpush.bf16.msrb.mxu0 %v1909_v21 }
 0x4c3   :  { %1247 = vmatpush.bf16.msrb.mxu0 %v1908_v22 }
 0x53b   :  { %v893_v37 = vpop.f32.mrf.mxu0 }
 0x53c   :  { %v894_v39 = vadd.f32 %v1944_v38, %v893_v37  ;;  %v1919_v37 = vld [vmem:[#allocation10 + $0x18] sm:$0xff] }
 0x53e   :  { %v898_v41 = vmax.f32 %v894_v39, 0.0  ;;  %v1917_v39 = vld [vmem:[#allocation10 + $0x8] sm:$0xff] }
 0x540   :  { %v900_v44 = vadd.f32 %v898_v41, %v811_v26  ;;  %v1920_v26 = vld [vmem:[#allocation10 + $0x20] sm:$0xff] }
 0x541   :  { %1330 = vmatpush.bf16.msrb.mxu1 %v1920_v26 }
 0x543   :  { %v895_v40 = vpop.f32.mrf.mxu0 }
 0x544   :  { %v896_v42 = vadd.f32 %v1944_v38, %v895_v40  ;;  %v1918_v38 = vld [vmem:[#allocation10 + $0x10] sm:$0xff]  ;;  %v1916_v40 = vld [vmem:[#allocation10] sm:$0xff] }
 0x545   :  { %1331 = vmatpush.bf16.msrb.mxu1 %v1919_v37 }
 0x546   :  { %v899_v43 = vmax.f32 %v896_v42, 0.0  ;;  %v1948_v42 = vld [vmem:[#allocation8 + $0xb] ss:$0 sm:$0xff] }
 0x548   :  { %v901_v45 = vadd.f32 %v899_v43, %v812_v27 }
 0x549   :  { %1332 = vmatpush.bf16.msrb.mxu1 %v1918_v38 }
 0x54a   :  { %v902_v46 = vpack.c.bf16 %v901_v45, %v900_v44 }
 0x54c   :  { %981 = vmatmul.bf16.vlgmr.msra.gmra.mxu1 %v902_v46 }
 0x54d   :  { %1333 = vmatpush.bf16.msrb.mxu1 %v1917_v39 }
 0x551   :  { %1334 = vmatpush.bf16.msrb.mxu1 %v1916_v40 }
 0x5c9   :  { %v982_v55 = vpop.f32.mrf.mxu1 }
 0x5ca   :  { %v983_v57 = vadd.f32 %v1945_v56, %v982_v55 }
 0x5cc   :  { %v987_v59 = vmax.f32 %v983_v57, 0.0 }
 0x5ce   :  { %v989_v62 = vadd.f32 %v987_v59, %v900_v44 }
 0x5d1   :  { %v984_v58 = vpop.f32.mrf.mxu1 }
 0x5d2   :  { %v985_v60 = vadd.f32 %v1945_v56, %v984_v58 }
 0x5d4   :  { %v988_v61 = vmax.f32 %v985_v60, 0.0 }
 0x5d6   :  { %v990_v63 = vadd.f32 %v988_v61, %v901_v45 }
 0x5d8   :  { %v991_v0 = vpack.c.bf16 %v990_v63, %v989_v62 }
 0x5da   :  { %1070 = vmatmul.bf16.vlgmr.msra.gmra.mxu2 %v991_v0 }
 0x65d   :  { %v1071_v9 = vpop.f32.mrf.mxu2 }
 0x65e   :  { %v1072_v11 = vadd.f32 %v1946_v10, %v1071_v9 }
 0x660   :  { %v1076_v13 = vmax.f32 %v1072_v11, 0.0 }
 0x662   :  { %v1078_v16 = vadd.f32 %v1076_v13, %v989_v62 }
 0x665   :  { %v1073_v12 = vpop.f32.mrf.mxu2 }
 0x666   :  { %v1074_v14 = vadd.f32 %v1946_v10, %v1073_v12 }
 0x668   :  { %v1077_v15 = vmax.f32 %v1074_v14, 0.0 }
 0x66a   :  { %v1079_v17 = vadd.f32 %v1077_v15, %v990_v63 }
 0x66c   :  { %v1080_v18 = vpack.c.bf16 %v1079_v17, %v1078_v16 }
 0x66e   :  { %1159 = vmatmul.bf16.vlgmr.msra.gmra.mxu3 %v1080_v18 }
 0x6f1   :  { %v1160_v27 = vpop.f32.mrf.mxu3 }
 0x6f2   :  { %v1161_v29 = vadd.f32 %v1947_v28, %v1160_v27 }
 0x6f4   :  { %v1165_v31 = vmax.f32 %v1161_v29, 0.0 }
 0x6f6   :  { %v1167_v34 = vadd.f32 %v1165_v31, %v1078_v16 }
 0x6f9   :  { %v1162_v30 = vpop.f32.mrf.mxu3 }
 0x6fa   :  { %v1163_v32 = vadd.f32 %v1947_v28, %v1162_v30 }
 0x6fc   :  { %v1166_v33 = vmax.f32 %v1163_v32, 0.0 }
 0x6fe   :  { %v1168_v35 = vadd.f32 %v1166_v33, %v1079_v17 }
 0x700   :  { %v1169_v36 = vpack.c.bf16 %v1168_v35, %v1167_v34 }
 0x702   :  { %1248 = vmatmul.bf16.vlgmr.msrb.gmra.mxu0 %v1169_v36 }
 0x77f   :  { %v1249_v41 = vpop.f32.mrf.mxu0 }
 0x780   :  { %v1250_v43 = vadd.f32 %v1948_v42, %v1249_v41 }
 0x782   :  { %v1254_v45 = vmax.f32 %v1250_v43, 0.0 }
 0x784   :  { %v1256_v48 = vadd.f32 %v1254_v45, %v1167_v34 }
 0x787   :  { %v1251_v44 = vpop.f32.mrf.mxu0 }
 0x788   :  { %v1252_v46 = vadd.f32 %v1948_v42, %v1251_v44 }
 0x78a   :  { %v1255_v47 = vmax.f32 %v1252_v46, 0.0 }
 0x78c   :  { %v1257_v49 = vadd.f32 %v1255_v47, %v1168_v35 }
 0x78e   :  { %v1258_v50 = vpack.c.bf16 %v1257_v49, %v1256_v48 }
 0x790   :  { %1335 = vmatmul.bf16.vlgmr.msrb.gmra.mxu1 %v1258_v50 }
 0x80d   :  { %v1336_v52 = vpop.f32.mrf.mxu1 }
 0x80e   :  { %v1337_v53 = vadd.f32 %v1949_v51, %v1336_v52 }
 0x810   :  { %1341 = vst [vmem:[#allocation11] sm:$0xff] %v1337_v53 }
 0x815   :  { %v1338_v54 = vpop.f32.mrf.mxu1 }
 0x816   :  { %v1339_v55 = vadd.f32 %v1949_v51, %v1338_v54 }
 0x818   :  { %1342 = vst [vmem:[#allocation11 + $0x8] sm:$0xff] %v1339_v55 }
 0x819   :  { %1355 = dma.vmem_to_hbm [thread:$0]  %s1348_s8, 256, %s1350_s11, [#allocation4], %s2109_s21, %s2109_s21, %s2110_s22  }
 0x81a   :  { %2100 = dma.done.wait [#allocation4], 256  }
 0x81b   :  { %2101 = vsyncadd [#allocation4], 4294967040 }
 0x81c   :  { %1360 = vsyncpa [#allocation3], 1 }
 0x81d   :  { %1361 = vsyncpa [#allocation6], 1 }
 0x81e   :  { %1362 = vsyncpa [#allocation9], 1 }
 0x81f   :  { %1363 = vsyncpa [#allocation4], 1 }

</bundles_post_ra>
